<compile_context>
chip_gen: v5e
topology: v5e:2x2
jax: 0.10.0
libtpu: 0.0.40
codegen_flags: <defaults>
</compile_context>

<pallas_src>
import functools

import jax
import jax.numpy as jnp
from jax import lax
from jax.experimental import pallas as pl
from jax.experimental.pallas import tpu as pltpu


# --------------------------------------------------------------------------
# Kernel
# --------------------------------------------------------------------------
def _multi_q_kernel(s_ref, a_ref, w1s_ref, w1a_ref, b1_ref, w2_ref, b2_ref,
                    w3t_ref, b3_ref, out_ref, *, block_diag, ensembles, hidden):
    # s_ref:(TB,S) f32   a_ref:(TB,A) f32          (cast to bf16 in-kernel)
    # w1s:(S,EH) bf16    w1a:(A,EH) bf16           b1:(1,EH) f32
    # w2: (EH,EH) bf16 block-diagonal  OR  (E,H,H) bf16      b2:(1,EH) f32
    # w3t:(E,EH) bf16 (row e nonzero only in ensemble-e's H cols)  b3:(E,1) f32
    # out:(E,TB) f32  -- batch on lanes => unmasked, lane-dense stores
    xs = s_ref[...].astype(jnp.bfloat16)
    xa = a_ref[...].astype(jnp.bfloat16)
    h1 = (jnp.dot(xs, w1s_ref[...], preferred_element_type=jnp.float32)
          + jnp.dot(xa, w1a_ref[...], preferred_element_type=jnp.float32)
          + b1_ref[...])
    h1 = jnp.maximum(h1, 0.0).astype(jnp.bfloat16)

    if block_diag:
        z2 = jnp.dot(h1, w2_ref[...], preferred_element_type=jnp.float32)
    else:
        # E*H exceeds one MXU pass: per-ensemble (TB,H)@(H,H) dots avoid the
        # E-fold zero-block FLOP/VMEM waste of the dense block-diagonal form.
        parts = [
            jnp.dot(h1[:, e * hidden:(e + 1) * hidden], w2_ref[e],
                    preferred_element_type=jnp.float32)
            for e in range(ensembles)
        ]
        z2 = jnp.concatenate(parts, axis=1)
    h2 = jnp.maximum(z2 + b2_ref[...], 0.0).astype(jnp.bfloat16)

    # Layer 3, transposed: contract (E,EH) with (TB,EH) over EH -> (E,TB),
    # i.e. A @ B^T on the MXU.  Output is lane-dense (batch on lanes).
    q_t = lax.dot_general(w3t_ref[...], h2,
                          dimension_numbers=(((1,), (1,)), ((), ())),
                          preferred_element_type=jnp.float32)
    out_ref[...] = (q_t + b3_ref[...]).astype(out_ref.dtype)


# --------------------------------------------------------------------------
# Parameter packing: per-ensemble (E, ...) weights -> fused wide/packed layout
# --------------------------------------------------------------------------
def pack_params(params, state_dim, *, block_diag=True, compute_dtype=jnp.bfloat16):
    w1, b1 = params["w1"], params["b1"]   # (E, D, H), (E, 1, H)
    w2, b2 = params["w2"], params["b2"]   # (E, H, H), (E, 1, H)
    w3, b3 = params["w3"], params["b3"]   # (E, H, 1), (E, 1, 1)
    E, D, H = w1.shape
    EH = E * H
    eye = jnp.eye(E, dtype=w1.dtype)

    # Layer 1: split along (state|action) input rows, fuse ensembles along the
    # output axis.  Column layout is (e, h) -> e*H + h.
    w1s = jnp.transpose(w1[:, :state_dim, :], (1, 0, 2)).reshape(state_dim, EH)
    w1a = jnp.transpose(w1[:, state_dim:, :], (1, 0, 2)).reshape(D - state_dim, EH)
    b1w = jnp.transpose(b1, (1, 0, 2)).reshape(1, EH)

    # Layer 2: block-diagonal (EH, EH) when it fits one MXU pass, otherwise
    # keep (E, H, H) for per-ensemble dots inside the kernel.
    if block_diag:
        w2p = jnp.einsum("ehk,ef->ehfk", w2, eye).reshape(EH, EH)
    else:
        w2p = w2
    b2w = jnp.transpose(b2, (1, 0, 2)).reshape(1, EH)

    # Layer 3, transposed + packed: (E, EH); row e reads only ensemble e's cols.
    w3t = jnp.einsum("eh,ef->efh", w3[..., 0], eye).reshape(E, EH)
    b3w = b3.reshape(E, 1)

    return dict(
        w1s=w1s.astype(compute_dtype),
        w1a=w1a.astype(compute_dtype),
        b1=b1w.astype(jnp.float32),
        w2=w2p.astype(compute_dtype),
        b2=b2w.astype(jnp.float32),
        w3t=w3t.astype(compute_dtype),
        b3=b3w.astype(jnp.float32),
    )


# --------------------------------------------------------------------------
# Wrapper
# --------------------------------------------------------------------------
def _round_up(x, m):
    return ((x + m - 1) // m) * m


def multi_q_forward(state, action, params, *, max_batch_tile=2048,
                    block_diag_max_width=256):
    """Forward pass of MultiQNetwork.

    state: (B, state_dim) f32; action: (B, action_dim) f32.
    Returns (E, B, 1) f32, matching torch.stack([q(state, action) ...], dim=0).

    block_diag_max_width: largest E*H for which the fused block-diagonal W2 is
    used (one MXU pass).  Set 128 on v5e, 256 on v6e/v7x.
    """
    B, S = state.shape
    A = action.shape[1]
    E, _, H = params["w1"].shape
    EH = E * H
    block_diag = EH <= block_diag_max_width

    packed = pack_params(params, S, block_diag=block_diag)

    # Batch tiling: big, 128-aligned tiles (kernel is per-step-overhead bound),
    # but keep >= 2 tiles for large B so "parallel" can use both v7x TCs.
    if B <= 256:
        TB = B
    else:
        TB = min(max_batch_tile, _round_up(pl.cdiv(B, 2), 128))
    grid = (pl.cdiv(B, TB),)

    # Explicit VMEM budget: weights (x2 headroom), double-buffered IO tiles,
    # activation intermediates.  Floor at the 32 MiB default, cap below v7x's
    # 64 MiB physical VMEM.
    weight_bytes = sum(int(v.size) * v.dtype.itemsize for v in packed.values())
    io_bytes = 2 * (TB * (S + A) * 4 + E * TB * 4)
    act_bytes = 4 * TB * EH * 4
    vmem_limit = int(min(max(32 * 1024 * 1024,
                             2 * weight_bytes + io_bytes + act_bytes + (4 << 20)),
                         56 * 1024 * 1024))

    cost = pl.CostEstimate(
        flops=int(2 * B * ((S + A) * EH
                           + (EH * EH if block_diag else E * H * H)
                           + EH * E)),
        transcendentals=0,
        bytes_accessed=int(B * (S + A) * 4 + weight_bytes + E * B * 4),
    )

    kernel = functools.partial(_multi_q_kernel, block_diag=block_diag,
                               ensembles=E, hidden=H)
    w2_shape = (EH, EH) if block_diag else (E, H, H)

    def run(single_buffer_weights):
        def wspec(shape):
            kwargs = ({"pipeline_mode": pl.Buffered(1)}
                      if single_buffer_weights else {})
            return pl.BlockSpec(shape, lambda i: (0,) * len(shape), **kwargs)

        grid_spec = pltpu.PrefetchScalarGridSpec(
            num_scalar_prefetch=0,
            grid=grid,
            in_specs=[
                pl.BlockSpec((TB, S), lambda i: (i, 0)),   # state tile (f32)
                pl.BlockSpec((TB, A), lambda i: (i, 0)),   # action tile (f32)
                wspec((S, EH)),                            # W1, state half (resident)
                wspec((A, EH)),                            # W1, action half
                wspec((1, EH)),                            # b1
                wspec(w2_shape),                           # W2
                wspec((1, EH)),                            # b2
                wspec((E, EH)),                            # W3 (transposed, packed)
                wspec((E, 1)),                             # b3
            ],
            out_specs=pl.BlockSpec((E, TB), lambda i: (0, i)),  # lane-dense
        )
        return pl.pallas_call(
            kernel,
            out_shape=jax.ShapeDtypeStruct((E, B), jnp.float32),
            grid_spec=grid_spec,
            compiler_params=pltpu.CompilerParams(
                dimension_semantics=("parallel",),
                vmem_limit_bytes=vmem_limit),
            cost_estimate=cost,
        )(state, action, packed["w1s"], packed["w1a"], packed["b1"],
          packed["w2"], packed["b2"], packed["w3t"], packed["b3"])

    try:
        out = run(True)    # single-buffered resident weights (halves weight VMEM)
    except Exception:      # noqa: BLE001 - jax without Buffered(1) support: fall back
        out = run(False)

    # (E, B) -> (E, B, 1): matches torch.stack of per-net (B, 1) outputs.
    return out[:, :, None]


# --------------------------------------------------------------------------
# Parameter init mirroring the PyTorch module's __init__
# --------------------------------------------------------------------------
def init_multi_q_params(key, state_dim, action_dim, hidden_size, ensembles,
                        init_w=0.003):
    D = state_dim + action_dim
    H = hidden_size
    ks = jax.random.split(key, 6)

    def uni(k, shape, bound):
        return jax.random.uniform(k, shape, jnp.float32, -bound, bound)

    # nn.Linear default init: U(-1/sqrt(fan_in)); linear3 uses init_w.
    w1 = uni(ks[0], (ensembles, D, H), 1.0 / jnp.sqrt(D))
    b1 = uni(ks[1], (ensembles, 1, H), 1.0 / jnp.sqrt(D))
    w2 = uni(ks[2], (ensembles, H, H), 1.0 / jnp.sqrt(H))
    b2 = uni(ks[3], (ensembles, 1, H), 1.0 / jnp.sqrt(H))
    w3 = uni(ks[4], (ensembles, H, 1), init_w)
    b3 = uni(ks[5], (ensembles, 1, 1), init_w)
    return dict(w1=w1, b1=b1, w2=w2, b2=b2, w3=w3, b3=b3)


# --------------------------------------------------------------------------
# Pure-JAX references
# --------------------------------------------------------------------------
def _reference_forward_f32(state, action, params):
    x = jnp.concatenate([state, action], axis=1)
    outs = []
    for e in range(params["w1"].shape[0]):
        h1 = jax.nn.relu(x @ params["w1"][e] + params["b1"][e])
        h2 = jax.nn.relu(h1 @ params["w2"][e] + params["b2"][e])
        outs.append(h2 @ params["w3"][e] + params["b3"][e])
    return jnp.stack(outs, axis=0)


def _reference_forward_bf16(state, action, params):
    """Mirrors the kernel's mixed precision (bf16 matmul operands, f32
    accumulation / bias / ReLU)."""
    x = jnp.concatenate([state, action], axis=1).astype(jnp.bfloat16)
    outs = []
    for e in range(params["w1"].shape[0]):
        h1 = jnp.dot(x, params["w1"][e].astype(jnp.bfloat16),
                     preferred_element_type=jnp.float32) + params["b1"][e]
        h1 = jnp.maximum(h1, 0.0).astype(jnp.bfloat16)
        h2 = jnp.dot(h1, params["w2"][e].astype(jnp.bfloat16),
                     preferred_element_type=jnp.float32) + params["b2"][e]
        h2 = jnp.maximum(h2, 0.0).astype(jnp.bfloat16)
        q = jnp.dot(h2, params["w3"][e].astype(jnp.bfloat16),
                    preferred_element_type=jnp.float32) + params["b3"][e]
        outs.append(q)
    return jnp.stack(outs, axis=0)


if __name__ == "__main__":
    state_dim, action_dim, hidden_size, ensembles = 12, 4, 32, 2
    batch = 8

    key = jax.random.PRNGKey(0)
    k_params, k_state, k_action = jax.random.split(key, 3)

    params = init_multi_q_params(k_params, state_dim, action_dim,
                                 hidden_size, ensembles)
    state = jax.random.normal(k_state, (batch, state_dim), jnp.float32)
    action = jax.random.normal(k_action, (batch, action_dim), jnp.float32)

    out = multi_q_forward(state, action, params)
    out = jax.block_until_ready(out)
    assert out.shape == (ensembles, batch, 1), out.shape

    # Tight check against a reference using the kernel's bf16 compute precision.
    ref_bf16 = _reference_forward_bf16(state, action, params)
    err_bf16 = float(jnp.max(jnp.abs(out - ref_bf16)))
    assert jnp.allclose(out, ref_bf16, atol=1e-3, rtol=1e-3), \
        f"bf16-ref max err {err_bf16}"

    # Loose sanity check against the full-f32 reference (bf16 rounding noise).
    ref_f32 = _reference_forward_f32(state, action, params)
    err_f32 = float(jnp.max(jnp.abs(out - ref_f32)))
    assert jnp.allclose(out, ref_f32, atol=2e-2, rtol=2e-1), \
        f"f32-ref max err {err_f32}"

    print("KERNEL_OK")
</pallas_src>

<mosaic_0001>
module attributes {stable_mosaic.version = 11 : i64} {
  func.func @_multi_q_kernel(%arg0: i32, %arg1: memref<8x12xf32, #tpu.memory_space<vmem>>, %arg2: memref<8x4xf32, #tpu.memory_space<vmem>>, %arg3: memref<12x64xbf16, #tpu.memory_space<vmem>>, %arg4: memref<4x64xbf16, #tpu.memory_space<vmem>>, %arg5: memref<1x64xf32, #tpu.memory_space<vmem>>, %arg6: memref<64x64xbf16, #tpu.memory_space<vmem>>, %arg7: memref<1x64xf32, #tpu.memory_space<vmem>>, %arg8: memref<2x64xbf16, #tpu.memory_space<vmem>>, %arg9: memref<2x1xf32, #tpu.memory_space<vmem>>, %arg10: memref<2x8xf32, #tpu.memory_space<vmem>>) attributes {dimension_semantics = [#tpu.dimension_semantics<parallel>], iteration_bounds = array<i64: 1>, scalar_prefetch = 0 : i64, scratch_operands = 0 : i64, tpu.core_type = #tpu.core_type<tc>, window_params = [{transform_indices = @transform_0, window_bounds = array<i64: 8, 12>}, {transform_indices = @transform_1, window_bounds = array<i64: 8, 4>}, {pipeline_mode = #tpu.pipeline_mode<synchronous>, transform_indices = @transform_2, window_bounds = array<i64: 12, 64>}, {pipeline_mode = #tpu.pipeline_mode<synchronous>, transform_indices = @transform_3, window_bounds = array<i64: 4, 64>}, {pipeline_mode = #tpu.pipeline_mode<synchronous>, transform_indices = @transform_4, window_bounds = array<i64: 1, 64>}, {pipeline_mode = #tpu.pipeline_mode<synchronous>, transform_indices = @transform_5, window_bounds = array<i64: 64, 64>}, {pipeline_mode = #tpu.pipeline_mode<synchronous>, transform_indices = @transform_6, window_bounds = array<i64: 1, 64>}, {pipeline_mode = #tpu.pipeline_mode<synchronous>, transform_indices = @transform_7, window_bounds = array<i64: 2, 64>}, {pipeline_mode = #tpu.pipeline_mode<synchronous>, transform_indices = @transform_8, window_bounds = array<i64: 2, 1>}, {transform_indices = @transform_9, window_bounds = array<i64: 2, 8>}]} {
    %c0 = arith.constant 0 : index
    %c0_0 = arith.constant 0 : index
    %0 = vector.load %arg1[%c0, %c0_0] : memref<8x12xf32, #tpu.memory_space<vmem>>, vector<8x12xf32>
    %1 = arith.truncf %0 : vector<8x12xf32> to vector<8x12xbf16>
    %c0_1 = arith.constant 0 : index
    %c0_2 = arith.constant 0 : index
    %2 = vector.load %arg2[%c0_1, %c0_2] : memref<8x4xf32, #tpu.memory_space<vmem>>, vector<8x4xf32>
    %3 = arith.truncf %2 : vector<8x4xf32> to vector<8x4xbf16>
    %c0_3 = arith.constant 0 : index
    %c0_4 = arith.constant 0 : index
    %4 = vector.load %arg3[%c0_3, %c0_4] : memref<12x64xbf16, #tpu.memory_space<vmem>>, vector<12x64xbf16>
    %cst = arith.constant dense<0.000000e+00> : vector<8x64xf32>
    %5 = tpu.matmul %1, %4, %cst {dimension_numbers = #tpu.dot_dimension_numbers<[1], [0], [0], [1], [0, 0, 1, 1], [], []>} : vector<8x12xbf16>, vector<12x64xbf16>, vector<8x64xf32> -> vector<8x64xf32>
    %c0_5 = arith.constant 0 : index
    %c0_6 = arith.constant 0 : index
    %6 = vector.load %arg4[%c0_5, %c0_6] : memref<4x64xbf16, #tpu.memory_space<vmem>>, vector<4x64xbf16>
    %cst_7 = arith.constant dense<0.000000e+00> : vector<8x64xf32>
    %7 = tpu.matmul %3, %6, %cst_7 {dimension_numbers = #tpu.dot_dimension_numbers<[1], [0], [0], [1], [0, 0, 1, 1], [], []>} : vector<8x4xbf16>, vector<4x64xbf16>, vector<8x64xf32> -> vector<8x64xf32>
    %8 = arith.addf %5, %7 : vector<8x64xf32>
    %c0_8 = arith.constant 0 : index
    %c0_9 = arith.constant 0 : index
    %9 = vector.load %arg5[%c0_8, %c0_9] : memref<1x64xf32, #tpu.memory_space<vmem>>, vector<1x64xf32>
    %10 = vector.broadcast %9 : vector<1x64xf32> to vector<8x64xf32>
    %11 = arith.addf %8, %10 : vector<8x64xf32>
    %cst_10 = arith.constant 0.000000e+00 : f32
    %12 = vector.broadcast %cst_10 : f32 to vector<8x64xf32>
    %13 = arith.maximumf %11, %12 : vector<8x64xf32>
    %14 = arith.truncf %13 : vector<8x64xf32> to vector<8x64xbf16>
    %c0_11 = arith.constant 0 : index
    %c0_12 = arith.constant 0 : index
    %15 = vector.load %arg6[%c0_11, %c0_12] : memref<64x64xbf16, #tpu.memory_space<vmem>>, vector<64x64xbf16>
    %cst_13 = arith.constant dense<0.000000e+00> : vector<8x64xf32>
    %16 = tpu.matmul %14, %15, %cst_13 {dimension_numbers = #tpu.dot_dimension_numbers<[1], [0], [0], [1], [0, 0, 1, 1], [], []>} : vector<8x64xbf16>, vector<64x64xbf16>, vector<8x64xf32> -> vector<8x64xf32>
    %c0_14 = arith.constant 0 : index
    %c0_15 = arith.constant 0 : index
    %17 = vector.load %arg7[%c0_14, %c0_15] : memref<1x64xf32, #tpu.memory_space<vmem>>, vector<1x64xf32>
    %18 = vector.broadcast %17 : vector<1x64xf32> to vector<8x64xf32>
    %19 = arith.addf %16, %18 : vector<8x64xf32>
    %cst_16 = arith.constant 0.000000e+00 : f32
    %20 = vector.broadcast %cst_16 : f32 to vector<8x64xf32>
    %21 = arith.maximumf %19, %20 : vector<8x64xf32>
    %22 = arith.truncf %21 : vector<8x64xf32> to vector<8x64xbf16>
    %c0_17 = arith.constant 0 : index
    %c0_18 = arith.constant 0 : index
    %23 = vector.load %arg8[%c0_17, %c0_18] : memref<2x64xbf16, #tpu.memory_space<vmem>>, vector<2x64xbf16>
    %cst_19 = arith.constant dense<0.000000e+00> : vector<2x8xf32>
    %24 = tpu.matmul %23, %22, %cst_19 {dimension_numbers = #tpu.dot_dimension_numbers<[1], [1], [0], [0], [0, 0, 1, 0], [], []>} : vector<2x64xbf16>, vector<8x64xbf16>, vector<2x8xf32> -> vector<2x8xf32>
    %c0_20 = arith.constant 0 : index
    %c0_21 = arith.constant 0 : index
    %25 = vector.load %arg9[%c0_20, %c0_21] : memref<2x1xf32, #tpu.memory_space<vmem>>, vector<2x1xf32>
    %26 = vector.broadcast %25 : vector<2x1xf32> to vector<2x8xf32>
    %27 = arith.addf %24, %26 : vector<2x8xf32>
    %c0_22 = arith.constant 0 : index
    %c0_23 = arith.constant 0 : index
    %28 = vector.load %arg10[%c0_22, %c0_23] : memref<2x8xf32, #tpu.memory_space<vmem>>, vector<2x8xf32>
    tpu.vector_store %arg10[%c0_22, %c0_23], %27 {strides = array<i32>} : memref<2x8xf32, #tpu.memory_space<vmem>>, vector<2x8xf32>,
    return
  }
  func.func @transform_0(%arg0: i32) -> (i32, i32) {
    %c0_i32 = arith.constant 0 : i32
    %c0_i32_0 = arith.constant 0 : i32
    return %arg0, %c0_i32 : i32, i32
  }
  func.func @transform_1(%arg0: i32) -> (i32, i32) {
    %c0_i32 = arith.constant 0 : i32
    %c0_i32_0 = arith.constant 0 : i32
    return %arg0, %c0_i32 : i32, i32
  }
  func.func @transform_2(%arg0: i32) -> (i32, i32) {
    %c0_i32 = arith.constant 0 : i32
    %c0_i32_0 = arith.constant 0 : i32
    %c0_i32_1 = arith.constant 0 : i32
    return %c0_i32, %c0_i32_0 : i32, i32
  }
  func.func @transform_3(%arg0: i32) -> (i32, i32) {
    %c0_i32 = arith.constant 0 : i32
    %c0_i32_0 = arith.constant 0 : i32
    %c0_i32_1 = arith.constant 0 : i32
    return %c0_i32, %c0_i32_0 : i32, i32
  }
  func.func @transform_4(%arg0: i32) -> (i32, i32) {
    %c0_i32 = arith.constant 0 : i32
    %c0_i32_0 = arith.constant 0 : i32
    %c0_i32_1 = arith.constant 0 : i32
    return %c0_i32, %c0_i32_0 : i32, i32
  }
  func.func @transform_5(%arg0: i32) -> (i32, i32) {
    %c0_i32 = arith.constant 0 : i32
    %c0_i32_0 = arith.constant 0 : i32
    %c0_i32_1 = arith.constant 0 : i32
    return %c0_i32, %c0_i32_0 : i32, i32
  }
  func.func @transform_6(%arg0: i32) -> (i32, i32) {
    %c0_i32 = arith.constant 0 : i32
    %c0_i32_0 = arith.constant 0 : i32
    %c0_i32_1 = arith.constant 0 : i32
    return %c0_i32, %c0_i32_0 : i32, i32
  }
  func.func @transform_7(%arg0: i32) -> (i32, i32) {
    %c0_i32 = arith.constant 0 : i32
    %c0_i32_0 = arith.constant 0 : i32
    %c0_i32_1 = arith.constant 0 : i32
    return %c0_i32, %c0_i32_0 : i32, i32
  }
  func.func @transform_8(%arg0: i32) -> (i32, i32) {
    %c0_i32 = arith.constant 0 : i32
    %c0_i32_0 = arith.constant 0 : i32
    %c0_i32_1 = arith.constant 0 : i32
    return %c0_i32, %c0_i32_0 : i32, i32
  }
  func.func @transform_9(%arg0: i32) -> (i32, i32) {
    %c0_i32 = arith.constant 0 : i32
    %c0_i32_0 = arith.constant 0 : i32
    return %c0_i32, %arg0 : i32, i32
  }
}

module attributes {stable_mosaic.version = 11 : i64} {
  func.func @_multi_q_kernel(%arg0: i32, %arg1: memref<8x12xf32, #tpu.memory_space<vmem>>, %arg2: memref<8x4xf32, #tpu.memory_space<vmem>>, %arg3: memref<12x64xbf16, #tpu.memory_space<vmem>>, %arg4: memref<4x64xbf16, #tpu.memory_space<vmem>>, %arg5: memref<1x64xf32, #tpu.memory_space<vmem>>, %arg6: memref<64x64xbf16, #tpu.memory_space<vmem>>, %arg7: memref<1x64xf32, #tpu.memory_space<vmem>>, %arg8: memref<2x64xbf16, #tpu.memory_space<vmem>>, %arg9: memref<2x1xf32, #tpu.memory_space<vmem>>, %arg10: memref<2x8xf32, #tpu.memory_space<vmem>>) attributes {dimension_semantics = [#tpu.dimension_semantics<parallel>], iteration_bounds = array<i64: 1>, scalar_prefetch = 0 : i64, scratch_operands = 0 : i64, tpu.core_type = #tpu.core_type<tc>, window_params = [{transform_indices = @transform_0, window_bounds = array<i64: 8, 12>}, {transform_indices = @transform_1, window_bounds = array<i64: 8, 4>}, {pipeline_mode = #tpu.pipeline_mode<synchronous>, transform_indices = @transform_2, window_bounds = array<i64: 12, 64>}, {pipeline_mode = #tpu.pipeline_mode<synchronous>, transform_indices = @transform_3, window_bounds = array<i64: 4, 64>}, {pipeline_mode = #tpu.pipeline_mode<synchronous>, transform_indices = @transform_4, window_bounds = array<i64: 1, 64>}, {pipeline_mode = #tpu.pipeline_mode<synchronous>, transform_indices = @transform_5, window_bounds = array<i64: 64, 64>}, {pipeline_mode = #tpu.pipeline_mode<synchronous>, transform_indices = @transform_6, window_bounds = array<i64: 1, 64>}, {pipeline_mode = #tpu.pipeline_mode<synchronous>, transform_indices = @transform_7, window_bounds = array<i64: 2, 64>}, {pipeline_mode = #tpu.pipeline_mode<synchronous>, transform_indices = @transform_8, window_bounds = array<i64: 2, 1>}, {transform_indices = @transform_9, window_bounds = array<i64: 2, 8>}]} {
    %c0 = arith.constant 0 : index
    %c0_0 = arith.constant 0 : index
    %0 = vector.load %arg1[%c0, %c0_0] : memref<8x12xf32, #tpu.memory_space<vmem>>, vector<8x12xf32>
    %1 = arith.truncf %0 : vector<8x12xf32> to vector<8x12xbf16>
    %c0_1 = arith.constant 0 : index
    %c0_2 = arith.constant 0 : index
    %2 = vector.load %arg2[%c0_1, %c0_2] : memref<8x4xf32, #tpu.memory_space<vmem>>, vector<8x4xf32>
    %3 = arith.truncf %2 : vector<8x4xf32> to vector<8x4xbf16>
    %c0_3 = arith.constant 0 : index
    %c0_4 = arith.constant 0 : index
    %4 = vector.load %arg3[%c0_3, %c0_4] : memref<12x64xbf16, #tpu.memory_space<vmem>>, vector<12x64xbf16>
    %cst = arith.constant dense<0.000000e+00> : vector<8x64xf32>
    %5 = tpu.matmul %1, %4, %cst {dimension_numbers = #tpu.dot_dimension_numbers<[1], [0], [0], [1], [0, 0, 1, 1], [], []>} : vector<8x12xbf16>, vector<12x64xbf16>, vector<8x64xf32> -> vector<8x64xf32>
    %c0_5 = arith.constant 0 : index
    %c0_6 = arith.constant 0 : index
    %6 = vector.load %arg4[%c0_5, %c0_6] : memref<4x64xbf16, #tpu.memory_space<vmem>>, vector<4x64xbf16>
    %cst_7 = arith.constant dense<0.000000e+00> : vector<8x64xf32>
    %7 = tpu.matmul %3, %6, %cst_7 {dimension_numbers = #tpu.dot_dimension_numbers<[1], [0], [0], [1], [0, 0, 1, 1], [], []>} : vector<8x4xbf16>, vector<4x64xbf16>, vector<8x64xf32> -> vector<8x64xf32>
    %8 = arith.addf %5, %7 : vector<8x64xf32>
    %c0_8 = arith.constant 0 : index
    %c0_9 = arith.constant 0 : index
    %9 = vector.load %arg5[%c0_8, %c0_9] : memref<1x64xf32, #tpu.memory_space<vmem>>, vector<1x64xf32>
    %10 = vector.broadcast %9 : vector<1x64xf32> to vector<8x64xf32>
    %11 = arith.addf %8, %10 : vector<8x64xf32>
    %cst_10 = arith.constant 0.000000e+00 : f32
    %12 = vector.broadcast %cst_10 : f32 to vector<8x64xf32>
    %13 = arith.maximumf %11, %12 : vector<8x64xf32>
    %14 = arith.truncf %13 : vector<8x64xf32> to vector<8x64xbf16>
    %c0_11 = arith.constant 0 : index
    %c0_12 = arith.constant 0 : index
    %15 = vector.load %arg6[%c0_11, %c0_12] : memref<64x64xbf16, #tpu.memory_space<vmem>>, vector<64x64xbf16>
    %cst_13 = arith.constant dense<0.000000e+00> : vector<8x64xf32>
    %16 = tpu.matmul %14, %15, %cst_13 {dimension_numbers = #tpu.dot_dimension_numbers<[1], [0], [0], [1], [0, 0, 1, 1], [], []>} : vector<8x64xbf16>, vector<64x64xbf16>, vector<8x64xf32> -> vector<8x64xf32>
    %c0_14 = arith.constant 0 : index
    %c0_15 = arith.constant 0 : index
    %17 = vector.load %arg7[%c0_14, %c0_15] : memref<1x64xf32, #tpu.memory_space<vmem>>, vector<1x64xf32>
    %18 = vector.broadcast %17 : vector<1x64xf32> to vector<8x64xf32>
    %19 = arith.addf %16, %18 : vector<8x64xf32>
    %cst_16 = arith.constant 0.000000e+00 : f32
    %20 = vector.broadcast %cst_16 : f32 to vector<8x64xf32>
    %21 = arith.maximumf %19, %20 : vector<8x64xf32>
    %22 = arith.truncf %21 : vector<8x64xf32> to vector<8x64xbf16>
    %c0_17 = arith.constant 0 : index
    %c0_18 = arith.constant 0 : index
    %23 = vector.load %arg8[%c0_17, %c0_18] : memref<2x64xbf16, #tpu.memory_space<vmem>>, vector<2x64xbf16>
    %cst_19 = arith.constant dense<0.000000e+00> : vector<2x8xf32>
    %24 = tpu.matmul %23, %22, %cst_19 {dimension_numbers = #tpu.dot_dimension_numbers<[1], [1], [0], [0], [0, 0, 1, 0], [], []>} : vector<2x64xbf16>, vector<8x64xbf16>, vector<2x8xf32> -> vector<2x8xf32>
    %c0_20 = arith.constant 0 : index
    %c0_21 = arith.constant 0 : index
    %25 = vector.load %arg9[%c0_20, %c0_21] : memref<2x1xf32, #tpu.memory_space<vmem>>, vector<2x1xf32>
    %26 = vector.broadcast %25 : vector<2x1xf32> to vector<2x8xf32>
    %27 = arith.addf %24, %26 : vector<2x8xf32>
    %c0_22 = arith.constant 0 : index
    %c0_23 = arith.constant 0 : index
    %28 = vector.load %arg10[%c0_22, %c0_23] : memref<2x8xf32, #tpu.memory_space<vmem>>, vector<2x8xf32>
    tpu.vector_store %arg10[%c0_22, %c0_23], %27 {strides = array<i32>} : memref<2x8xf32, #tpu.memory_space<vmem>>, vector<2x8xf32>,
    return
  }
  func.func @transform_0(%arg0: i32) -> (i32, i32) {
    %c0_i32 = arith.constant 0 : i32
    %c0_i32_0 = arith.constant 0 : i32
    return %arg0, %c0_i32 : i32, i32
  }
  func.func @transform_1(%arg0: i32) -> (i32, i32) {
    %c0_i32 = arith.constant 0 : i32
    %c0_i32_0 = arith.constant 0 : i32
    return %arg0, %c0_i32 : i32, i32
  }
  func.func @transform_2(%arg0: i32) -> (i32, i32) {
    %c0_i32 = arith.constant 0 : i32
    %c0_i32_0 = arith.constant 0 : i32
    %c0_i32_1 = arith.constant 0 : i32
    return %c0_i32, %c0_i32_0 : i32, i32
  }
  func.func @transform_3(%arg0: i32) -> (i32, i32) {
    %c0_i32 = arith.constant 0 : i32
    %c0_i32_0 = arith.constant 0 : i32
    %c0_i32_1 = arith.constant 0 : i32
    return %c0_i32, %c0_i32_0 : i32, i32
  }
  func.func @transform_4(%arg0: i32) -> (i32, i32) {
    %c0_i32 = arith.constant 0 : i32
    %c0_i32_0 = arith.constant 0 : i32
    %c0_i32_1 = arith.constant 0 : i32
    return %c0_i32, %c0_i32_0 : i32, i32
  }
  func.func @transform_5(%arg0: i32) -> (i32, i32) {
    %c0_i32 = arith.constant 0 : i32
    %c0_i32_0 = arith.constant 0 : i32
    %c0_i32_1 = arith.constant 0 : i32
    return %c0_i32, %c0_i32_0 : i32, i32
  }
  func.func @transform_6(%arg0: i32) -> (i32, i32) {
    %c0_i32 = arith.constant 0 : i32
    %c0_i32_0 = arith.constant 0 : i32
    %c0_i32_1 = arith.constant 0 : i32
    return %c0_i32, %c0_i32_0 : i32, i32
  }
  func.func @transform_7(%arg0: i32) -> (i32, i32) {
    %c0_i32 = arith.constant 0 : i32
    %c0_i32_0 = arith.constant 0 : i32
    %c0_i32_1 = arith.constant 0 : i32
    return %c0_i32, %c0_i32_0 : i32, i32
  }
  func.func @transform_8(%arg0: i32) -> (i32, i32) {
    %c0_i32 = arith.constant 0 : i32
    %c0_i32_0 = arith.constant 0 : i32
    %c0_i32_1 = arith.constant 0 : i32
    return %c0_i32, %c0_i32_0 : i32, i32
  }
  func.func @transform_9(%arg0: i32) -> (i32, i32) {
    %c0_i32 = arith.constant 0 : i32
    %c0_i32_0 = arith.constant 0 : i32
    return %c0_i32, %arg0 : i32, i32
  }
}

</mosaic_0001>

<bundles_post_ra>
// kernel: tpu_custom_call.1
= control target key start
LH: loop header
LB: loop body
LE: loop exit
PB: predicated region body
PF: predicated region fallthrough
CT: control target
= control target key end

     0   :  { %14 = vsyncpa [#allocation3], 0  ;;  %s434_s0 = inlined_call_operand.vmem [shape: f32[8,12], index: 0, kind: input, shape index: {}]   ;;  %s435_s1 = inlined_call_operand.vmem [shape: f32[8,4], index: 1, kind: input, shape index: {}]   ;;  %s436_s2 = inlined_call_operand.vmem [shape: bf16[12,64], index: 2, kind: input, shape index: {}]   ;;  %s437_s3 = inlined_call_operand.hbm [shape: bf16[4,64], index: 3, kind: input, shape index: {}]   ;;  %s438_s4 = inlined_call_operand.vmem [shape: f32[1,64], index: 4, kind: input, shape index: {}]   ;;  %s439_s5 = inlined_call_operand.hbm [shape: bf16[64,64], index: 5, kind: input, shape index: {}]   ;;  %s440_s6 = inlined_call_operand.vmem [shape: f32[1,64], index: 6, kind: input, shape index: {}]   ;;  %s441_s7 = inlined_call_operand.vmem [shape: bf16[2,64], index: 7, kind: input, shape index: {}]   ;;  %s442_s8 = inlined_call_operand.vmem [shape: f32[2,1], index: 8, kind: input, shape index: {}]   ;;  %s443_s9 = inlined_call_operand.hbm [shape: f32[2,8], index: 9, kind: output, shape index: {}]  }
   0x1   :  { %15 = vsyncpa [#allocation6], 0 }
   0x2   :  { %16 = vsyncpa [#allocation4], 0  ;;  %s28_s11 = sshll.u32 %s437_s3, 4  ;;  %s342_s12 = smov [#allocation2]   ;;  %s29_s11 = int_to_ptr.hbm [resolvable:$true] %s28_s11 }
   0x3   :  { %s30_s13 = sshll.u32 %s342_s12, 4  ;;  %s40_s16 = sshll.u32 %s439_s5, 4  ;;  %s31_s13 = int_to_ptr.vmem [resolvable:$true] %s30_s13  ;;  %s41_s16 = int_to_ptr.hbm [resolvable:$true] %s40_s16 }
   0x4   :  { %33 = dma.hbm_to_vmem [thread:$0]  %s29_s11, 32, %s31_s13, [#allocation3]  }
   0x5   :  { %s343_s17 = smov [#allocation5]   ;;  %s344_s19 = smov 64  }
   0x6   :  { %s42_s18 = sshll.u32 %s343_s17, 4  ;;  %s345_s20 = smov 4   ;;  %s43_s18 = int_to_ptr.vmem [resolvable:$true] %s42_s18 }
   0x7   :  { %48 = dma.hbm_to_vmem [thread:$0]  %s41_s16, 512, %s43_s18, [#allocation6], %s344_s19, %s344_s19, %s345_s20  }
   0x8   :  { %336 = dma.done.wait [#allocation3], 32  }
   0x9   :  { %337 = vsyncadd [#allocation3], 4294967264 }
   0xa   :  { %338 = dma.done.wait [#allocation6], 512  }
   0xb   :  { %339 = vsyncadd [#allocation6], 4294966784  ;;  %vm75_vm0 = vcmask 1041408   ;;  %vm101_vm1 = vcmask 1045504   ;;  %v70_v0 = vld [vmem:[#allocation2] sm:$0x3] }
   0xc   :  { %v229_v1 = vld [vmem:[%s436_s2] sm:$0xf]  ;;  %v250_v2 = vld [vmem:[%s436_s2] sm:$0x30]  ;;  %v77_v3 = vsel %vm75_vm0, %v70_v0, 0  ;;  %vm71_vm2 = vcmask 31744  }
   0xd   :  { %v230_v4 = vor.u32 %v250_v2, %v229_v1  ;;  %v66_v5 = vld [vmem:[%s435_s1] sm:$0xff]  ;;  %86 = vmatpush.bf16.msra.mxu0 %v77_v3  ;;  %vm97_vm3 = vcmask 97280   ;;  %v253_v11 = vld [vmem:[#allocation5 + $0x10] sm:$0xff]  ;;  %v252_v12 = vld [vmem:[#allocation5 + $0x8] sm:$0xff]  ;;  %vm161_vm4 = vcmask 523264   ;;  %v346_v24 = vmov 0  }
   0xe   :  { %v64_v6 = vld [vmem:[%s434_s0] sm:$0xff]  ;;  %v67_v8 = vpack.c.bf16 %v66_v5, %v66_v5  ;;  %261 = vset.pattern.permute.xlu0 %v346_v24  ;;  %vm206_vm5 = vcmask 58368  }
   0xf   :  { %v254_v7 = vld [vmem:[#allocation5 + $0x18] sm:$0xff]  ;;  %v103_v9 = vsel %vm101_vm1, %v230_v4, 0  ;;  %v65_v10 = vpack.c.bf16 %v64_v6, %v64_v6  ;;  %v251_v13 = vld [vmem:[#allocation5] sm:$0xff] }
  0x10   :  { %169 = vmatpush.bf16.msra.mxu2 %v254_v7  ;;  %112 = vmatpush.bf16.msra.mxu1 %v103_v9  ;;  %v262_v15 = vld [vmem:[%s438_s4] ss:$0 sm:$0xff] }
  0x11   :  { %226 = vmatmul.msk.bf16.vlgmr.msra.gmra.mxu0 %vm71_vm2, %v67_v8  ;;  %v181_v23 = vld [vmem:[%s442_s8] sm:$0x3]  ;;  %s347_s8 = smov [#allocation7]  }
  0x12   :  { %184 = vperm.xlu0 %261, %v181_v23   ;;  %v263_v25 = vld [vmem:[%s440_s6] ss:$0 sm:$0xff]  ;;  %s213_s10 = sshll.u32 %s347_s8, 4  ;;  %s215_s6 = sshll.u32 %s443_s9, 4  ;;  %s214_s10 = int_to_ptr.vmem [resolvable:$true] %s213_s10  ;;  %s216_s6 = int_to_ptr.hbm [resolvable:$true] %s215_s6 }
  0x13   :  { %231 = vmatmul.msk.bf16.vlgmr.msra.gmra.mxu1 %vm97_vm3, %v65_v10  ;;  %v180_v32 = vld [vmem:[%s441_s7] sm:$0x1] }
  0x14   :  { %170 = vmatpush.bf16.msra.mxu2 %v253_v11 }
  0x18   :  { %171 = vmatpush.bf16.msra.mxu2 %v252_v12 }
  0x1c   :  { %172 = vmatpush.bf16.msra.mxu2 %v251_v13 }
  0x84   :  { %v185_v33 = vpop.permute.xlu0 %184 }
  0x8e   :  { %v88_v14 = vpop.f32.mrf.mxu0 }
  0x90   :  { %v114_v16 = vpop.f32.mrf.mxu1 }
  0x91   :  { %v115_v17 = vadd.f32 %v114_v16, %v88_v14 }
  0x93   :  { %v122_v18 = vadd.f32 %v262_v15, %v115_v17 }
  0x95   :  { %v123_v19 = vmax.f32 %v122_v18, 0.0 }
  0x96   :  { %v90_v20 = vpop.f32.mrf.mxu0 }
  0x97   :  { %v124_v21 = vpack.c.bf16 %v123_v19, %v123_v19 }
  0x98   :  { %v116_v22 = vpop.f32.mrf.mxu1 }
  0x99   :  { %248 = vmatmul.msk.bf16.vlgmr.msra.gmra.mxu2 %vm161_vm4, %v124_v21 }
 0x11c   :  { %v174_v26 = vpop.f32.mrf.mxu2 }
 0x11d   :  { %v175_v27 = vadd.f32 %v263_v25, %v174_v26 }
 0x11f   :  { %v178_v28 = vmax.f32 %v175_v27, 0.0 }
 0x121   :  { %v179_v29 = vpack.c.bf16 %v178_v28, %v178_v28 }
 0x123   :  { %v191_v30 = vsel %vm161_vm4, %v179_v29, 0 }
 0x124   :  { %v176_v31 = vpop.f32.mrf.mxu2  ;;  %200 = vmatpush.bf16.xpose.msra.mxu3 %v191_v30 }
 0x12b   :  { %249 = vmatmul.msk.bf16.vlgmr.msra.gmra.mxu3 %vm161_vm4, %v180_v32 }
 0x1ae   :  { %v202_v34 = vpop.f32.mrf.mxu3 }
 0x1af   :  { %v203_v35 = vadd.f32 %v202_v34, %v185_v33 }
 0x1b1   :  { %207 = vst.msk [vmem:[#allocation7] sm:$0x3] %vm206_vm5, %v203_v35 }
 0x1b2   :  { %218 = dma.vmem_to_hbm [thread:$0]  %s214_s10, 32, %s216_s6, [#allocation4]  }
 0x1b6   :  { %v204_v36 = vpop.f32.mrf.mxu3 }
 0x1b7   :  { %340 = dma.done.wait [#allocation4], 32  }
 0x1b8   :  { %341 = vsyncadd [#allocation4], 4294967264 }
 0x1b9   :  { %223 = vsyncpa [#allocation3], 1 }
 0x1ba   :  { %224 = vsyncpa [#allocation6], 1 }
 0x1bb   :  { %225 = vsyncpa [#allocation4], 1 }

// kernel: tpu_custom_call.1
= control target key start
LH: loop header
LB: loop body
LE: loop exit
PB: predicated region body
PF: predicated region fallthrough
CT: control target
= control target key end

     0   :  { %14 = vsyncpa [#allocation3], 0  ;;  %s434_s0 = inlined_call_operand.vmem [shape: f32[8,12], index: 0, kind: input, shape index: {}]   ;;  %s435_s1 = inlined_call_operand.vmem [shape: f32[8,4], index: 1, kind: input, shape index: {}]   ;;  %s436_s2 = inlined_call_operand.vmem [shape: bf16[12,64], index: 2, kind: input, shape index: {}]   ;;  %s437_s3 = inlined_call_operand.hbm [shape: bf16[4,64], index: 3, kind: input, shape index: {}]   ;;  %s438_s4 = inlined_call_operand.vmem [shape: f32[1,64], index: 4, kind: input, shape index: {}]   ;;  %s439_s5 = inlined_call_operand.hbm [shape: bf16[64,64], index: 5, kind: input, shape index: {}]   ;;  %s440_s6 = inlined_call_operand.vmem [shape: f32[1,64], index: 6, kind: input, shape index: {}]   ;;  %s441_s7 = inlined_call_operand.vmem [shape: bf16[2,64], index: 7, kind: input, shape index: {}]   ;;  %s442_s8 = inlined_call_operand.vmem [shape: f32[2,1], index: 8, kind: input, shape index: {}]   ;;  %s443_s9 = inlined_call_operand.hbm [shape: f32[2,8], index: 9, kind: output, shape index: {}]  }
   0x1   :  { %15 = vsyncpa [#allocation6], 0 }
   0x2   :  { %16 = vsyncpa [#allocation4], 0  ;;  %s28_s11 = sshll.u32 %s437_s3, 4  ;;  %s342_s12 = smov [#allocation2]   ;;  %s29_s11 = int_to_ptr.hbm [resolvable:$true] %s28_s11 }
   0x3   :  { %s30_s13 = sshll.u32 %s342_s12, 4  ;;  %s40_s16 = sshll.u32 %s439_s5, 4  ;;  %s31_s13 = int_to_ptr.vmem [resolvable:$true] %s30_s13  ;;  %s41_s16 = int_to_ptr.hbm [resolvable:$true] %s40_s16 }
   0x4   :  { %33 = dma.hbm_to_vmem [thread:$0]  %s29_s11, 32, %s31_s13, [#allocation3]  }
   0x5   :  { %s343_s17 = smov [#allocation5]   ;;  %s344_s19 = smov 64  }
   0x6   :  { %s42_s18 = sshll.u32 %s343_s17, 4  ;;  %s345_s20 = smov 4   ;;  %s43_s18 = int_to_ptr.vmem [resolvable:$true] %s42_s18 }
   0x7   :  { %48 = dma.hbm_to_vmem [thread:$0]  %s41_s16, 512, %s43_s18, [#allocation6], %s344_s19, %s344_s19, %s345_s20  }
   0x8   :  { %336 = dma.done.wait [#allocation3], 32  }
   0x9   :  { %337 = vsyncadd [#allocation3], 4294967264 }
   0xa   :  { %338 = dma.done.wait [#allocation6], 512  }
   0xb   :  { %339 = vsyncadd [#allocation6], 4294966784  ;;  %vm75_vm0 = vcmask 1041408   ;;  %vm101_vm1 = vcmask 1045504   ;;  %v70_v0 = vld [vmem:[#allocation2] sm:$0x3] }
   0xc   :  { %v229_v1 = vld [vmem:[%s436_s2] sm:$0xf]  ;;  %v250_v2 = vld [vmem:[%s436_s2] sm:$0x30]  ;;  %v77_v3 = vsel %vm75_vm0, %v70_v0, 0  ;;  %vm71_vm2 = vcmask 31744  }
   0xd   :  { %v230_v4 = vor.u32 %v250_v2, %v229_v1  ;;  %v66_v5 = vld [vmem:[%s435_s1] sm:$0xff]  ;;  %86 = vmatpush.bf16.msra.mxu0 %v77_v3  ;;  %vm97_vm3 = vcmask 97280   ;;  %v253_v11 = vld [vmem:[#allocation5 + $0x10] sm:$0xff]  ;;  %v252_v12 = vld [vmem:[#allocation5 + $0x8] sm:$0xff]  ;;  %vm161_vm4 = vcmask 523264   ;;  %v346_v24 = vmov 0  }
   0xe   :  { %v64_v6 = vld [vmem:[%s434_s0] sm:$0xff]  ;;  %v67_v8 = vpack.c.bf16 %v66_v5, %v66_v5  ;;  %261 = vset.pattern.permute.xlu0 %v346_v24  ;;  %vm206_vm5 = vcmask 58368  }
   0xf   :  { %v254_v7 = vld [vmem:[#allocation5 + $0x18] sm:$0xff]  ;;  %v103_v9 = vsel %vm101_vm1, %v230_v4, 0  ;;  %v65_v10 = vpack.c.bf16 %v64_v6, %v64_v6  ;;  %v251_v13 = vld [vmem:[#allocation5] sm:$0xff] }
  0x10   :  { %169 = vmatpush.bf16.msra.mxu2 %v254_v7  ;;  %112 = vmatpush.bf16.msra.mxu1 %v103_v9  ;;  %v262_v15 = vld [vmem:[%s438_s4] ss:$0 sm:$0xff] }
  0x11   :  { %226 = vmatmul.msk.bf16.vlgmr.msra.gmra.mxu0 %vm71_vm2, %v67_v8  ;;  %v181_v23 = vld [vmem:[%s442_s8] sm:$0x3]  ;;  %s347_s8 = smov [#allocation7]  }
  0x12   :  { %184 = vperm.xlu0 %261, %v181_v23   ;;  %v263_v25 = vld [vmem:[%s440_s6] ss:$0 sm:$0xff]  ;;  %s213_s10 = sshll.u32 %s347_s8, 4  ;;  %s215_s6 = sshll.u32 %s443_s9, 4  ;;  %s214_s10 = int_to_ptr.vmem [resolvable:$true] %s213_s10  ;;  %s216_s6 = int_to_ptr.hbm [resolvable:$true] %s215_s6 }
  0x13   :  { %231 = vmatmul.msk.bf16.vlgmr.msra.gmra.mxu1 %vm97_vm3, %v65_v10  ;;  %v180_v32 = vld [vmem:[%s441_s7] sm:$0x1] }
  0x14   :  { %170 = vmatpush.bf16.msra.mxu2 %v253_v11 }
  0x18   :  { %171 = vmatpush.bf16.msra.mxu2 %v252_v12 }
  0x1c   :  { %172 = vmatpush.bf16.msra.mxu2 %v251_v13 }
  0x84   :  { %v185_v33 = vpop.permute.xlu0 %184 }
  0x8e   :  { %v88_v14 = vpop.f32.mrf.mxu0 }
  0x90   :  { %v114_v16 = vpop.f32.mrf.mxu1 }
  0x91   :  { %v115_v17 = vadd.f32 %v114_v16, %v88_v14 }
  0x93   :  { %v122_v18 = vadd.f32 %v262_v15, %v115_v17 }
  0x95   :  { %v123_v19 = vmax.f32 %v122_v18, 0.0 }
  0x96   :  { %v90_v20 = vpop.f32.mrf.mxu0 }
  0x97   :  { %v124_v21 = vpack.c.bf16 %v123_v19, %v123_v19 }
  0x98   :  { %v116_v22 = vpop.f32.mrf.mxu1 }
  0x99   :  { %248 = vmatmul.msk.bf16.vlgmr.msra.gmra.mxu2 %vm161_vm4, %v124_v21 }
 0x11c   :  { %v174_v26 = vpop.f32.mrf.mxu2 }
 0x11d   :  { %v175_v27 = vadd.f32 %v263_v25, %v174_v26 }
 0x11f   :  { %v178_v28 = vmax.f32 %v175_v27, 0.0 }
 0x121   :  { %v179_v29 = vpack.c.bf16 %v178_v28, %v178_v28 }
 0x123   :  { %v191_v30 = vsel %vm161_vm4, %v179_v29, 0 }
 0x124   :  { %v176_v31 = vpop.f32.mrf.mxu2  ;;  %200 = vmatpush.bf16.xpose.msra.mxu3 %v191_v30 }
 0x12b   :  { %249 = vmatmul.msk.bf16.vlgmr.msra.gmra.mxu3 %vm161_vm4, %v180_v32 }
 0x1ae   :  { %v202_v34 = vpop.f32.mrf.mxu3 }
 0x1af   :  { %v203_v35 = vadd.f32 %v202_v34, %v185_v33 }
 0x1b1   :  { %207 = vst.msk [vmem:[#allocation7] sm:$0x3] %vm206_vm5, %v203_v35 }
 0x1b2   :  { %218 = dma.vmem_to_hbm [thread:$0]  %s214_s10, 32, %s216_s6, [#allocation4]  }
 0x1b6   :  { %v204_v36 = vpop.f32.mrf.mxu3 }
 0x1b7   :  { %340 = dma.done.wait [#allocation4], 32  }
 0x1b8   :  { %341 = vsyncadd [#allocation4], 4294967264 }
 0x1b9   :  { %223 = vsyncpa [#allocation3], 1 }
 0x1ba   :  { %224 = vsyncpa [#allocation6], 1 }
 0x1bb   :  { %225 = vsyncpa [#allocation4], 1 }

</bundles_post_ra>
